<compile_context>
chip_gen: v6e
topology: v6e:2x2x1
jax: 0.10.0
libtpu: 0.0.40
codegen_flags: <defaults>
</compile_context>

<pallas_src>
import functools

import jax
import jax.numpy as jnp
from jax.experimental import pallas as pl
from jax.experimental.pallas import tpu as pltpu


def _dwt_kernel(x_ref, w_ref, b_ref, low_ref, high_ref, *, o_out, o_pad):
    # x_ref : (4C, TP)        phase-stacked channels on sublanes, pixels on lanes.
    # w_ref : (2*o_pad, 4C)   rows [0:o_out] = folded low weights,
    #                         rows [o_pad:o_pad+o_out] = folded high weights.
    # b_ref : (2*o_pad, 1)    broadcast along the pixel (lane) axis.
    y = jnp.dot(w_ref[...], x_ref[...], preferred_element_type=jnp.float32)
    y = y + b_ref[...]
    low_ref[...] = y[:o_out].astype(low_ref.dtype)
    high_ref[...] = y[o_pad:o_pad + o_out].astype(high_ref.dtype)


def _round_up(v, m):
    return -(-v // m) * m


def _choose_tile(P, c4, o_out, o_pad, itemsize, budget_bytes, max_tile):
    """Pick the pixel-tile width (lane dim) and the (possibly padded) total P."""
    # Per-lane VMEM bytes for one grid step: input block + 2 output blocks
    # (each double-buffered by the Pallas pipeline) + the f32 intermediate y.
    per_lane = (2 * c4 * itemsize          # input block (x2 buffers)
                + 4 * o_out * itemsize     # two output blocks (x2 buffers)
                + 2 * o_pad * 4)           # y intermediate (f32)
    cap = budget_bytes // max(per_lane, 1)
    cap = min(cap, max_tile)
    cap = max(128, (cap // 128) * 128)
    if P <= cap:
        return P, P                        # single full-extent tile, no padding
    # Prefer a 128-multiple divisor of P -> no input pad, no output slice.
    t = cap
    while t >= 128:
        if P % t == 0:
            return t, P
        t -= 128
    # Fallback: pad P up to a multiple of the capped tile (rare; still correct).
    n_tiles = -(-P // cap)
    return cap, n_tiles * cap


@functools.partial(jax.jit,
                   static_argnames=("tile_p", "vmem_budget_bytes", "max_tile"))
def dwt_transform(x, w_low, b_low, w_high, b_high, *,
                  tile_p=None, vmem_budget_bytes=14 * 2**20, max_tile=32768):
    """x: [B, C, H, W] (NCHW, like PyTorch). Returns (low, high), both NCHW.

    w_low:  [O, C, 1, 1]   b_low:  [O]
    w_high: [O, 3C, 1, 1]  b_high: [O]
    """
    B, C, H, W = x.shape
    O = w_low.shape[0]
    H2, W2 = H // 2, W // 2
    P = H2 * W2
    dtype = x.dtype
    o_pad = _round_up(max(O, 1), 8)

    # --- phase extraction: one fused strided-slice + concat (1 read + 1 write).
    # xr[b, c, h2, rp, w2, cp] = x[b, c, 2*h2+rp, 2*w2+cp]   (free reshape)
    xr = x.reshape(B, C, H2, 2, W2, 2)
    x1 = xr[:, :, :, 0, :, 0]   # even rows, even cols
    x2 = xr[:, :, :, 1, :, 0]   # odd  rows, even cols
    x3 = xr[:, :, :, 0, :, 1]   # even rows, odd  cols
    x4 = xr[:, :, :, 1, :, 1]   # odd  rows, odd  cols
    xph = jnp.concatenate([x1, x2, x3, x4], axis=1).reshape(B, 4 * C, P)

    # --- fold Haar (+/- and 0.5) into the 1x1-conv weights and merge low/high
    #     into ONE matrix; the high block starts at a sublane boundary (o_pad).
    wl0 = w_low[:, :, 0, 0].astype(jnp.float32)             # [O, C]
    wh0 = w_high[:, :, 0, 0].astype(jnp.float32)             # [O, 3C]
    wh1, wh2, wh3 = wh0[:, :C], wh0[:, C:2 * C], wh0[:, 2 * C:]
    # phase order matches xph: [x1, x2, x3, x4]
    wl_fold = 0.5 * jnp.concatenate([wl0, wl0, wl0, wl0], axis=1)            # [O, 4C]
    wh_fold = 0.5 * jnp.concatenate([-wh1 - wh2 + wh3,                       # x1
                                     -wh1 + wh2 - wh3,                       # x2
                                     wh1 - wh2 - wh3,                        # x3
                                     wh1 + wh2 + wh3], axis=1)               # x4
    w_all = jnp.zeros((2 * o_pad, 4 * C), jnp.float32)
    w_all = w_all.at[:O].set(wl_fold).at[o_pad:o_pad + O].set(wh_fold)
    b_all = jnp.zeros((2 * o_pad, 1), jnp.float32)
    b_all = b_all.at[:O, 0].set(b_low.astype(jnp.float32))
    b_all = b_all.at[o_pad:o_pad + O, 0].set(b_high.astype(jnp.float32))
    if x.dtype != jnp.float32:
        w_all = w_all.astype(x.dtype)      # MXU-native mixed input, f32 accumulate

    # --- pixel tiling (lane axis), VMEM-budget aware, divisor-preferring.
    max_t = max_tile if tile_p is None else max(128, int(tile_p))
    tp, Pp = _choose_tile(P, 4 * C, O, o_pad, x.dtype.itemsize,
                          vmem_budget_bytes, max_t)
    if Pp != P:
        xph = jnp.pad(xph, ((0, 0), (0, 0), (0, Pp - P)))

    grid = (B, Pp // tp)

    x_spec = pl.BlockSpec((None, 4 * C, tp), lambda b, i: (b, 0, i))
    w_spec = pl.BlockSpec((2 * o_pad, 4 * C), lambda b, i: (0, 0))
    b_spec = pl.BlockSpec((2 * o_pad, 1), lambda b, i: (0, 0))
    out_spec = pl.BlockSpec((None, O, tp), lambda b, i: (b, 0, i))

    kernel = functools.partial(_dwt_kernel, o_out=O, o_pad=o_pad)

    low_flat, high_flat = pl.pallas_call(
        kernel,
        out_shape=(jax.ShapeDtypeStruct((B, O, Pp), dtype),
                   jax.ShapeDtypeStruct((B, O, Pp), dtype)),
        grid=grid,
        in_specs=[x_spec, w_spec, b_spec],
        out_specs=(out_spec, out_spec),
        compiler_params=pltpu.CompilerParams(
            dimension_semantics=("parallel", "parallel"),
            vmem_limit_bytes=32 * 1024 * 1024),
    )(xph, w_all, b_all)

    if Pp != P:
        low_flat = low_flat[:, :, :P]
        high_flat = high_flat[:, :, :P]
    low = low_flat.reshape(B, O, H2, W2)
    high = high_flat.reshape(B, O, H2, W2)
    return low, high


def _reference(x, w_low, b_low, w_high, b_high):
    """Pure-JAX reference mirroring the PyTorch module."""
    x01 = x[:, :, 0::2, :] / 2
    x02 = x[:, :, 1::2, :] / 2
    x1 = x01[:, :, :, 0::2]
    x2 = x02[:, :, :, 0::2]
    x3 = x01[:, :, :, 1::2]
    x4 = x02[:, :, :, 1::2]
    x_ll = x1 + x2 + x3 + x4
    x_hl = -x1 - x2 + x3 + x4
    x_lh = -x1 + x2 - x3 + x4
    x_hh = x1 - x2 - x3 + x4
    high_in = jnp.concatenate((x_hl, x_lh, x_hh), axis=1)

    def conv1x1(inp, w, b):
        out = jnp.einsum("bchw,oc->bohw", inp, w[:, :, 0, 0])
        return out + b[None, :, None, None]

    return conv1x1(x_ll, w_low, b_low), conv1x1(high_in, w_high, b_high)


if __name__ == "__main__":
    B, C, H, W = 2, 4, 16, 16
    O = 8

    key = jax.random.PRNGKey(0)
    kx, kwl, kbl, kwh, kbh = jax.random.split(key, 5)

    x = jax.random.normal(kx, (B, C, H, W), dtype=jnp.float32)
    # PyTorch conv shapes: weight [O, Cin, 1, 1], bias [O].
    w_low = jax.random.normal(kwl, (O, C, 1, 1), dtype=jnp.float32) * 0.1
    b_low = jax.random.normal(kbl, (O,), dtype=jnp.float32) * 0.1
    w_high = jax.random.normal(kwh, (O, 3 * C, 1, 1), dtype=jnp.float32) * 0.1
    b_high = jax.random.normal(kbh, (O,), dtype=jnp.float32) * 0.1

    low, high = dwt_transform(x, w_low, b_low, w_high, b_high)
    jax.block_until_ready((low, high))

    ref_low, ref_high = _reference(x, w_low, b_low, w_high, b_high)
    assert low.shape == (B, O, H // 2, W // 2) and high.shape == (B, O, H // 2, W // 2)
    assert jnp.allclose(low, ref_low, atol=1e-5, rtol=1e-5)
    assert jnp.allclose(high, ref_high, atol=1e-5, rtol=1e-5)

    print("KERNEL_OK")
</pallas_src>

<mosaic_0001>
module attributes {stable_mosaic.version = 11 : i64} {
  func.func @_dwt_kernel(%arg0: i32, %arg1: i32, %arg2: memref<1x16x64xf32, #tpu.memory_space<vmem>>, %arg3: memref<16x16xf32, #tpu.memory_space<vmem>>, %arg4: memref<16x1xf32, #tpu.memory_space<vmem>>, %arg5: memref<1x8x64xf32, #tpu.memory_space<vmem>>, %arg6: memref<1x8x64xf32, #tpu.memory_space<vmem>>) attributes {dimension_semantics = [#tpu.dimension_semantics<parallel>, #tpu.dimension_semantics<parallel>], iteration_bounds = array<i64: 2, 1>, scalar_prefetch = 0 : i64, scratch_operands = 0 : i64, tpu.core_type = #tpu.core_type<tc>, window_params = [{transform_indices = @transform_0, window_bounds = array<i64: 1, 16, 64>}, {pipeline_mode = #tpu.pipeline_mode<synchronous>, transform_indices = @transform_1, window_bounds = array<i64: 16, 16>}, {pipeline_mode = #tpu.pipeline_mode<synchronous>, transform_indices = @transform_2, window_bounds = array<i64: 16, 1>}, {transform_indices = @transform_3, window_bounds = array<i64: 1, 8, 64>}, {transform_indices = @transform_4, window_bounds = array<i64: 1, 8, 64>}]} {
    %c0 = arith.constant 0 : index
    %c0_0 = arith.constant 0 : index
    %0 = vector.load %arg3[%c0, %c0_0] : memref<16x16xf32, #tpu.memory_space<vmem>>, vector<16x16xf32>
    %c0_1 = arith.constant 0 : index
    %c0_2 = arith.constant 0 : index
    %c0_3 = arith.constant 0 : index
    %1 = vector.load %arg2[%c0_1, %c0_2, %c0_3] : memref<1x16x64xf32, #tpu.memory_space<vmem>>, vector<1x16x64xf32>
    %2 = vector.shape_cast %1 : vector<1x16x64xf32> to vector<16x64xf32>
    %cst = arith.constant dense<0.000000e+00> : vector<16x64xf32>
    %3 = tpu.matmul %0, %2, %cst {dimension_numbers = #tpu.dot_dimension_numbers<[1], [0], [0], [1], [0, 0, 1, 1], [], []>} : vector<16x16xf32>, vector<16x64xf32>, vector<16x64xf32> -> vector<16x64xf32>
    %c0_4 = arith.constant 0 : index
    %c0_5 = arith.constant 0 : index
    %4 = vector.load %arg4[%c0_4, %c0_5] : memref<16x1xf32, #tpu.memory_space<vmem>>, vector<16x1xf32>
    %5 = vector.broadcast %4 : vector<16x1xf32> to vector<16x64xf32>
    %6 = arith.addf %3, %5 : vector<16x64xf32>
    %7 = vector.extract_strided_slice %6 {offsets = [0, 0], sizes = [8, 64], strides = [1, 1]} : vector<16x64xf32> to vector<8x64xf32>
    %c0_6 = arith.constant 0 : index
    %c0_7 = arith.constant 0 : index
    %c0_8 = arith.constant 0 : index
    %8 = vector.load %arg5[%c0_6, %c0_7, %c0_8] : memref<1x8x64xf32, #tpu.memory_space<vmem>>, vector<1x8x64xf32>
    %9 = vector.shape_cast %8 : vector<1x8x64xf32> to vector<8x64xf32>
    %10 = vector.shape_cast %7 : vector<8x64xf32> to vector<1x8x64xf32>
    tpu.vector_store %arg5[%c0_6, %c0_7, %c0_8], %10 {strides = array<i32>} : memref<1x8x64xf32, #tpu.memory_space<vmem>>, vector<1x8x64xf32>,
    %11 = vector.extract_strided_slice %6 {offsets = [8, 0], sizes = [8, 64], strides = [1, 1]} : vector<16x64xf32> to vector<8x64xf32>
    %c0_9 = arith.constant 0 : index
    %c0_10 = arith.constant 0 : index
    %c0_11 = arith.constant 0 : index
    %12 = vector.load %arg6[%c0_9, %c0_10, %c0_11] : memref<1x8x64xf32, #tpu.memory_space<vmem>>, vector<1x8x64xf32>
    %13 = vector.shape_cast %12 : vector<1x8x64xf32> to vector<8x64xf32>
    %14 = vector.shape_cast %11 : vector<8x64xf32> to vector<1x8x64xf32>
    tpu.vector_store %arg6[%c0_9, %c0_10, %c0_11], %14 {strides = array<i32>} : memref<1x8x64xf32, #tpu.memory_space<vmem>>, vector<1x8x64xf32>,
    return
  }
  func.func @transform_0(%arg0: i32, %arg1: i32) -> (i32, i32, i32) {
    %c0_i32 = arith.constant 0 : i32
    %c0_i32_0 = arith.constant 0 : i32
    return %arg0, %c0_i32, %arg1 : i32, i32, i32
  }
  func.func @transform_1(%arg0: i32, %arg1: i32) -> (i32, i32) {
    %c0_i32 = arith.constant 0 : i32
    %c0_i32_0 = arith.constant 0 : i32
    %c0_i32_1 = arith.constant 0 : i32
    return %c0_i32, %c0_i32_0 : i32, i32
  }
  func.func @transform_2(%arg0: i32, %arg1: i32) -> (i32, i32) {
    %c0_i32 = arith.constant 0 : i32
    %c0_i32_0 = arith.constant 0 : i32
    %c0_i32_1 = arith.constant 0 : i32
    return %c0_i32, %c0_i32_0 : i32, i32
  }
  func.func @transform_3(%arg0: i32, %arg1: i32) -> (i32, i32, i32) {
    %c0_i32 = arith.constant 0 : i32
    %c0_i32_0 = arith.constant 0 : i32
    return %arg0, %c0_i32, %arg1 : i32, i32, i32
  }
  func.func @transform_4(%arg0: i32, %arg1: i32) -> (i32, i32, i32) {
    %c0_i32 = arith.constant 0 : i32
    %c0_i32_0 = arith.constant 0 : i32
    return %arg0, %c0_i32, %arg1 : i32, i32, i32
  }
}

</mosaic_0001>

<bundles_post_ra>
// kernel: dwt_transform.1
= control target key start
LH: loop header
LB: loop body
LE: loop exit
PB: predicated region body
PF: predicated region fallthrough
CT: control target
= control target key end

     0   :  { %s566_s15 = smov 0   ;;  %s568_s16 = smov 0   ;;  %s616_s0 = inlined_call_operand.vmem [shape: f32[2,16,64], index: 0, kind: input, shape index: {}]   ;;  %s617_s1 = inlined_call_operand.vmem [shape: f32[16,16], index: 1, kind: input, shape index: {}]   ;;  %s618_s2 = inlined_call_operand.vmem [shape: f32[16,1], index: 2, kind: input, shape index: {}]   ;;  %s619_s3 = inlined_call_operand.vmem [shape: f32[2,8,64], index: 3, kind: output, shape index: {0}]   ;;  %s620_s4 = inlined_call_operand.vmem [shape: f32[2,8,64], index: 4, kind: output, shape index: {1}]  }
   0x1   :  { %s570_s17 = smov 0  }
   0x2 LB: > { %s27_s18 = sadd.s32 1, %s534_s16  ;;  %p469_p0 = scmp.ge.s32.totalorder %s538_s17, 1  ;;  %s538_s17 = sphi %s570_s17, %s15_s17   ;;  %s534_s16 = sphi %s568_s16, %s622_s16   ;;  %s530_s15 = sphi %s566_s15, %s621_s15  }
   0x3   : > { %p29_p1 = scmp.ge.s32.totalorder %s27_s18, 2  ;;  %p186_p2 = scmp.lt.s32.totalorder %s538_s17, 3 }
   0x5   : > { %s624_s18 = smov (%p29_p1, %s27_s18), 0  ;;  %p187_p3 = pnand %p469_p0, %p186_p2 }
   0x6   : > { %p224_p4 = scmp.lt.s32.totalorder (!%p187_p3), %s530_s15, 1 }
   0x7   : > { %190 = sbr.rel (%p187_p3) target bundleno = 218 (0xda), region = 32 }
   0xc   : > { %v246_v0 = vld [vmem:[%s617_s1] sm:$0xff]  ;;  %vm262_vm0 = vcmask 130048   ;;  %v540_v2 = vmov 0   ;;  %s626_s15 = smov (!%p224_p4, %s530_s15), 1  ;;  %v251_v3 = vld [vmem:[%s618_s2 + $0x8] sm:$0xff]  ;;  %vm344_vm1 = vcmask 523264  }
   0xd   : > { %v250_v1 = vld [vmem:[%s618_s2] sm:$0xff]  ;;  %487 = vmatprep.mubr.msk.f32.mxu0 %vm262_vm0, %v246_v0  ;;  %515 = vset.pattern.permute.xlu0 %v540_v2  ;;  %s478_s25 = sshll.u32 %s626_s15, 4  ;;  %v247_v6 = vld [vmem:[%s617_s1 + $0x8] sm:$0xff]  ;;  %s472_s5 = sshll.u32 %s626_s15, 3 }
   0xe   : > { %254 = vperm.xlu0 %515, %v250_v1   ;;  %s231_s28 = scalar_lea.vmem %s616_s0, %s478_s25  ;;  %s245_s8 = scalar_lea.vmem %s620_s4, %s472_s5 }
   0xf   : > { %v249_v4 = vld [vmem:[%s231_s28 + $0x8] sm:$0xff]  ;;  %v248_v5 = vld [vmem:[%s231_s28] sm:$0xff]  ;;  %s238_s11 = scalar_lea.vmem %s619_s3, %s472_s5 }
  0x10   : > { %483 = vmatprep.subr.mxu0 %v249_v4 }
  0x11   : > { %484 = vmatpush3.msra.mxu0 %v249_v4 }
  0x12   : > { %259 = vperm.xlu0 %515, %v251_v3   ;;  %485 = vmatprep.subr.mxu0 %v248_v5 }
  0x13   : > { %486 = vmatpush3.msra.mxu0 %v248_v5 }
  0x14   : > { %488 = vmatmul.mubr.msk.f32.vlgmr.msra.gmra.mxu0 %vm262_vm0, %v247_v6 }
  0x89   : > { %v255_v7 = vpop.permute.xlu0 %254 }
  0x8d   : > { %v260_v8 = vpop.permute.xlu0 %259 }
  0xd4   : > { %v489_v9 = vpop.f32.mrf.mxu0 }
  0xd5   : > { %v341_v10 = vadd.f32 %v489_v9, %v260_v8 }
  0xd6   : > { %v335_v11 = vpop.f32.mrf.mxu0 }
  0xd7   : > { %346 = vst.msk [vmem:[%s245_s8] sm:$0xff] %vm344_vm1, %v341_v10  ;;  %v336_v12 = vadd.f32 %v335_v11, %v255_v7 }
  0xd9   : > { %345 = vst.msk [vmem:[%s238_s11] sm:$0xff] %vm344_vm1, %v336_v12 }
  0xda PF: > { %s15_s17 = sadd.s32 1, %s538_s17   ;;  %s621_s15 = smov %s534_s16 }
  0xdb   : > { %p12_p5 = scmp.ge.s32.totalorder %s15_s17, 4   ;;  %s622_s16 = smov %s624_s18 }
  0xdd   :  { %14 = sbr.rel (!%p12_p5) target bundleno = 2 (0x2), region = 74 }

</bundles_post_ra>
